<compile_context>
chip_gen: v7x
topology: tpu7x:2x2x1
jax: 0.10.0
libtpu: 0.0.40
codegen_flags: <defaults>
</compile_context>

<pallas_src>
import math

import jax
import jax.numpy as jnp
from jax import lax
from jax.experimental import pallas as pl
from jax.experimental.pallas import tpu as pltpu


def sinusoidal_pos_emb_kernel(x_ref, const_ref, o_ref):
    """o = sin(x_sel * freqs + phase) in one full-width pass.

    x_ref:     (tb, g)        g timesteps folded per lane-dense output row
    const_ref: (g + 1, out_w) rows 0..g-1: one-hot*freq matrix W; row g: phase
    o_ref:     (tb, out_w)    out_w = g * dim
    """
    g = x_ref.shape[1]
    if g == 1:
        # dim is already a multiple of 128: exact f32 VPU outer product.
        arg = x_ref[...] * const_ref[0:1, :]
    else:
        # One-hot selection + frequency scaling on the otherwise-idle MXU.
        # f32 accumulation + HIGHEST precision: bf16 rounding of timesteps
        # (~0.06 abs at t~1000) would visibly corrupt the embedding.
        arg = jnp.dot(x_ref[...], const_ref[0:g, :],
                      preferred_element_type=jnp.float32,
                      precision=lax.Precision.HIGHEST)
    # cos lanes carry a +pi/2 phase -> single full-width sin.
    o_ref[...] = jnp.sin(arg + const_ref[g:g + 1, :]).astype(o_ref.dtype)


def _round_up(n: int, m: int) -> int:
    return ((n + m - 1) // m) * m


def sinusoidal_pos_emb(x: jax.Array, dim: int, *,
                       block_rows: int = 2048,
                       vmem_block_bytes: int = 4 * 1024 * 1024,
                       out_dtype=jnp.float32) -> jax.Array:
    """JAX wrapper mirroring SinusoidalPosEmb(dim).forward(x).

    x: (B,) timesteps.  Returns (B, dim) in `out_dtype` (default float32).
    """
    assert x.ndim == 1, "x must be a 1-D vector of timesteps"
    assert dim % 2 == 0 and dim >= 4, "dim must be even and >= 4"
    half = dim // 2
    B = x.shape[0]

    # ---- constants (tiny; in a real model cache these per (dim,)) ----------
    scale = math.log(10000.0) / (half - 1)
    freqs = jnp.exp(jnp.arange(half, dtype=jnp.float32) * (-scale))       # (half,)
    freqs_full = jnp.concatenate([freqs, freqs])                          # (dim,)
    phase_full = jnp.concatenate(
        [jnp.zeros((half,), jnp.float32),
         jnp.full((half,), math.pi / 2, jnp.float32)])                    # (dim,)

    # Lane-dense folding: pack g logical rows into one 128-lane-multiple
    # physical row so stores are unmasked full-width vst.
    if dim % 128 == 0:
        g = 1
    else:
        g = 128 // math.gcd(dim, 128)          # == lcm(dim, 128) // dim
        if g * dim > 2048:                     # keep W / blocks reasonable
            g = 1                              # fall back to masked stores
    out_w = g * dim

    # Merged constant: rows 0..g-1 = one-hot * freq matrix, row g = phase.
    k_idx = jnp.arange(g, dtype=jnp.int32)[:, None]
    j_idx = jnp.arange(out_w, dtype=jnp.int32)[None, :]
    w = jnp.where(j_idx // dim == k_idx,
                  jnp.tile(freqs_full, g)[None, :],
                  jnp.float32(0.0)).astype(jnp.float32)                   # (g, out_w)
    const = jnp.concatenate(
        [w, jnp.tile(phase_full, g).reshape(1, out_w)], axis=0)           # (g+1, out_w)

    # Fold timesteps (B,) -> (rows, g); pads at most g-1 zeros.
    rows = -(-B // g)
    b_fold = rows * g
    xf = x.astype(jnp.float32)
    if b_fold != B:
        xf = jnp.pad(xf, (0, b_fold - B))
    x_fold = xf.reshape(rows, g)

    # ---- row-block sizing ---------------------------------------------------
    # per-block VMEM = output tile + 128-lane-padded x tile (v7x 64 MiB budget);
    # keep >= ~4 grid steps when possible so "parallel" can use both v7x TCs.
    out_bytes_per_row = out_w * jnp.dtype(out_dtype).itemsize
    bytes_per_row = out_bytes_per_row + 128 * 4
    vmem_rows = max(8, (vmem_block_bytes // bytes_per_row) // 8 * 8)
    parallel_rows = max(8, _round_up(-(-rows // 4), 8))
    tb = max(8, (min(block_rows, vmem_rows, parallel_rows) // 8) * 8)
    if rows <= tb:
        tb = rows                               # single full block, no masking
    n_blocks = -(-rows // tb)

    out = pl.pallas_call(
        sinusoidal_pos_emb_kernel,
        out_shape=jax.ShapeDtypeStruct((rows, out_w), out_dtype),
        grid=(n_blocks,),
        in_specs=[
            pl.BlockSpec((tb, g), lambda i: (i, 0)),          # folded timesteps
            pl.BlockSpec((g + 1, out_w), lambda i: (0, 0)),   # W + phase (resident)
        ],
        out_specs=pl.BlockSpec((tb, out_w), lambda i: (i, 0)),
        compiler_params=pltpu.CompilerParams(
            dimension_semantics=("parallel",)),
    )(x_fold, const)

    # Un-fold (row-major reshape is the exact inverse of the packing); trim
    # only when the fold padded (<= g-1 rows).  For B % g == 0 the kernel
    # output is returned with zero extra copies.
    emb = out.reshape(b_fold, dim)
    if b_fold != B:
        emb = emb[:B]
    return emb


def _reference(x: jax.Array, dim: int) -> jax.Array:
    """Pure-JAX reference matching the PyTorch forward exactly."""
    half = dim // 2
    scale = math.log(10000.0) / (half - 1)
    freqs = jnp.exp(jnp.arange(half, dtype=jnp.float32) * (-scale))
    emb = x.astype(jnp.float32)[:, None] * freqs[None, :]
    return jnp.concatenate([jnp.sin(emb), jnp.cos(emb)], axis=-1)


if __name__ == "__main__":
    key = jax.random.PRNGKey(0)
    k1, k2, k3, k4 = jax.random.split(key, 4)

    # Case 1: dim=32 (g=4 lane-dense fold, MXU one-hot path), B % g == 0 so
    # there are zero post-kernel copies.  Tolerance covers the f32 MXU
    # multi-pass decomposition + the sin(a+pi/2) fold; an (incorrect) bf16
    # single-pass matmul of the timesteps would be ~0.1-0.2 off and fail.
    B1, D1 = 8, 32
    x1 = jax.random.uniform(k1, (B1,), jnp.float32, 0.0, 100.0)
    out1 = jax.block_until_ready(sinusoidal_pos_emb(x1, D1))
    ref1 = _reference(x1, D1)
    assert out1.shape == (B1, D1), out1.shape
    assert jnp.allclose(out1, ref1, atol=2e-3, rtol=1e-3), "mismatch (dim=32)"

    # Case 2: dim=128 (g=1, exact VPU multiply), B=37 not a multiple of the
    # row tile -> exercises the masked partial last block.  Only deviation is
    # the +pi/2 fold (<= 0.5 ulp(1000) ~ 3e-5).
    B2, D2 = 37, 128
    x2 = jax.random.uniform(k2, (B2,), jnp.float32, 0.0, 1000.0)
    out2 = jax.block_until_ready(sinusoidal_pos_emb(x2, D2))
    ref2 = _reference(x2, D2)
    assert out2.shape == (B2, D2), out2.shape
    assert jnp.allclose(out2, ref2, atol=1e-4, rtol=1e-4), "mismatch (dim=128)"

    # Case 3: dim=48 (128 % dim != 0 -> extended fold, g=8, out_w=384) with
    # B=10 not a multiple of g -> exercises the <= (g-1)-row fold trim.
    B3, D3 = 10, 48
    x3 = jax.random.uniform(k3, (B3,), jnp.float32, 0.0, 100.0)
    out3 = jax.block_until_ready(sinusoidal_pos_emb(x3, D3))
    ref3 = _reference(x3, D3)
    assert out3.shape == (B3, D3), out3.shape
    assert jnp.allclose(out3, ref3, atol=2e-3, rtol=1e-3), "mismatch (dim=48)"

    # Case 4: bf16 output path (HBM-write-bound v5e / bf16 consumers).
    B4, D4 = 8, 64
    x4 = jax.random.uniform(k4, (B4,), jnp.float32, 0.0, 100.0)
    out4 = jax.block_until_ready(
        sinusoidal_pos_emb(x4, D4, out_dtype=jnp.bfloat16))
    ref4 = _reference(x4, D4)
    assert out4.shape == (B4, D4) and out4.dtype == jnp.bfloat16
    assert jnp.allclose(out4.astype(jnp.float32), ref4, atol=2e-2, rtol=2e-2), \
        "mismatch (dim=64, bf16)"

    print("KERNEL_OK")
</pallas_src>

<mosaic_0001>
module attributes {stable_mosaic.version = 11 : i64} {
  func.func @sinusoidal_pos_emb_kernel(%arg0: i32, %arg1: memref<2x4xf32, #tpu.memory_space<vmem>>, %arg2: memref<5x128xf32, #tpu.memory_space<vmem>>, %arg3: memref<2x128xf32, #tpu.memory_space<vmem>>) attributes {dimension_semantics = [#tpu.dimension_semantics<parallel>], iteration_bounds = array<i64: 1>, scalar_prefetch = 0 : i64, scratch_operands = 0 : i64, tpu.core_type = #tpu.core_type<tc>, window_params = [{transform_indices = @transform_0, window_bounds = array<i64: 2, 4>}, {pipeline_mode = #tpu.pipeline_mode<synchronous>, transform_indices = @transform_1, window_bounds = array<i64: 5, 128>}, {transform_indices = @transform_2, window_bounds = array<i64: 2, 128>}]} {
    %c0 = arith.constant 0 : index
    %c0_0 = arith.constant 0 : index
    %0 = vector.load %arg1[%c0, %c0_0] : memref<2x4xf32, #tpu.memory_space<vmem>>, vector<2x4xf32>
    %c0_1 = arith.constant 0 : index
    %c0_2 = arith.constant 0 : index
    %1 = vector.load %arg2[%c0_1, %c0_2] : memref<5x128xf32, #tpu.memory_space<vmem>>, vector<4x128xf32>
    %cst = arith.constant dense<0.000000e+00> : vector<2x128xf32>
    %2 = tpu.matmul %0, %1, %cst {dimension_numbers = #tpu.dot_dimension_numbers<[1], [0], [0], [1], [0, 0, 1, 1], [], []>, precision = #tpu.contract_precision<fp32>} : vector<2x4xf32>, vector<4x128xf32>, vector<2x128xf32> -> vector<2x128xf32>
    %c4 = arith.constant 4 : index
    %c0_3 = arith.constant 0 : index
    %3 = vector.load %arg2[%c4, %c0_3] : memref<5x128xf32, #tpu.memory_space<vmem>>, vector<1x128xf32>
    %4 = vector.broadcast %3 : vector<1x128xf32> to vector<2x128xf32>
    %5 = arith.addf %2, %4 : vector<2x128xf32>
    %6 = math.sin %5 : vector<2x128xf32>
    %c0_4 = arith.constant 0 : index
    %c0_5 = arith.constant 0 : index
    %7 = vector.load %arg3[%c0_4, %c0_5] : memref<2x128xf32, #tpu.memory_space<vmem>>, vector<2x128xf32>
    tpu.vector_store %arg3[%c0_4, %c0_5], %6 {strides = array<i32>} : memref<2x128xf32, #tpu.memory_space<vmem>>, vector<2x128xf32>,
    return
  }
  func.func @transform_0(%arg0: i32) -> (i32, i32) {
    %c0_i32 = arith.constant 0 : i32
    %c0_i32_0 = arith.constant 0 : i32
    return %arg0, %c0_i32 : i32, i32
  }
  func.func @transform_1(%arg0: i32) -> (i32, i32) {
    %c0_i32 = arith.constant 0 : i32
    %c0_i32_0 = arith.constant 0 : i32
    %c0_i32_1 = arith.constant 0 : i32
    return %c0_i32, %c0_i32_0 : i32, i32
  }
  func.func @transform_2(%arg0: i32) -> (i32, i32) {
    %c0_i32 = arith.constant 0 : i32
    %c0_i32_0 = arith.constant 0 : i32
    return %arg0, %c0_i32 : i32, i32
  }
}

</mosaic_0001>

<bundles_post_ra>
// kernel: tpu_custom_call.1
= control target key start
LH: loop header
LB: loop body
LE: loop exit
PB: predicated region body
PF: predicated region fallthrough
CT: control target
= control target key end

     0   :  { %7 = vsyncpa [#allocation3], 0  ;;  %s855_s0 = inlined_call_operand.hbm [shape: f32[2,4], index: 0, kind: input, shape index: {}]   ;;  %s856_s1 = inlined_call_operand.hbm [shape: f32[5,128], index: 1, kind: input, shape index: {}]   ;;  %s857_s2 = inlined_call_operand.hbm [shape: f32[2,128], index: 2, kind: output, shape index: {}]  }
   0x1   :  { %8 = vsyncpa [#allocation6], 0 }
   0x2   :  { %9 = vsyncpa [#allocation4], 0  ;;  %s766_s9 = smov [#allocation2]   ;;  %s767_s11 = smov [#allocation5]  }
   0x3   :  { %s16_s10 = sshll.u32 %s766_s9, 4  ;;  %s26_s12 = sshll.u32 %s767_s11, 4  ;;  %s17_s10 = int_to_ptr.vmem [resolvable:$true] %s16_s10  ;;  %s27_s12 = int_to_ptr.vmem [resolvable:$true] %s26_s12 }
   0x4   :  { %s694_s15 = scalar_lea.hbm %s855_s0, 32 }
   0x5   :  { %p695_p0 = scmp.ne.s32.totalorder %s855_s0, %s694_s15  ;;  %p698_p1 = scmp.lt.u32.totalorder %s694_s15, %s855_s0 }
   0x7   :  { %p700_p2 = pnand %p698_p1, %p695_p0 }
   0x9   :  { %703 = shalt.err (!%p700_p2)
}
   0xa   :  { %s704_s20 = scalar_lea.vmem %s17_s10, 32  ;;  %p709_p4 = scmp.lt.s32.totalorder %s17_s10, %s17_s10 }
   0xb   :  { %p705_p3 = scmp.ne.s32.totalorder %s17_s10, %s704_s20  ;;  %p710_p5 = scmp.lt.s32.totalorder %s704_s20, %s704_s20 }
   0xd   :  { %p711_p6 = por %p710_p5, %p709_p4 }
   0xf   :  { %p712_p7 = pnand %p711_p6, %p705_p3 }
  0x11   :  { %715 = shalt.err (!%p712_p7)
}
  0x12   :  { %19 = dma.hbm_to_vmem [thread:$0]  %s855_s0, 32, %s17_s10, [#allocation3]  }
  0x13   :  { %s716_s25 = scalar_lea.hbm %s856_s1, 128 }
  0x14   :  { %p717_p8 = scmp.ne.s32.totalorder %s856_s1, %s716_s25  ;;  %p720_p9 = scmp.lt.u32.totalorder %s716_s25, %s856_s1 }
  0x16   :  { %p722_p10 = pnand %p720_p9, %p717_p8 }
  0x18   :  { %725 = shalt.err (!%p722_p10)
}
  0x19   :  { %s726_s30 = scalar_lea.vmem %s27_s12, 128  ;;  %p731_p12 = scmp.lt.s32.totalorder %s27_s12, %s27_s12 }
  0x1a   :  { %p727_p11 = scmp.ne.s32.totalorder %s27_s12, %s726_s30  ;;  %p732_p13 = scmp.lt.s32.totalorder %s726_s30, %s726_s30 }
  0x1c   :  { %p733_p0 = por %p732_p13, %p731_p12 }
  0x1e   :  { %p734_p1 = pnand %p733_p0, %p727_p11 }
  0x20   :  { %737 = shalt.err (!%p734_p1)
}
  0x21   :  { %29 = dma.hbm_to_vmem [thread:$0]  %s856_s1, 128, %s27_s12, [#allocation6]  }
  0x22   :  { %760 = dma.done.wait [#allocation3], 32  }
  0x23   :  { %761 = vsyncadd [#allocation3], 4294967264 }
  0x24   :  { %762 = dma.done.wait [#allocation6], 128  }
  0x25   :  { %763 = vsyncadd [#allocation6], 4294967168  ;;  %v768_v0 = vmov 0.0   ;;  %vm769_vm0 = vmmov 0   ;;  %vm47_vm1 = vcmask 1043456   ;;  %vm43_vm2 = vcmask 31744  }
  0x26   :  { %650 = vmatprep.subr.mxu0 %v768_v0  ;;  %652 = vmatprep.mubr.msk.f32.mxu0 %vm769_vm0, %v768_v0  ;;  %v37_v1 = vld [vmem:[#allocation5] sm:$0xf]  ;;  %v36_v2 = vld [vmem:[#allocation2] sm:$0x3]  ;;  %v618_v17 = vld [vmem:[#allocation5 + $0x4] ss:$0 sm:$0xff] }
  0x27   :  { %635 = vmatprep.subr.mxu1 %v768_v0  ;;  %637 = vmatprep.mubr.msk.f32.mxu1 %vm769_vm0, %v768_v0  ;;  %v49_v3 = vsel %vm47_vm1, %v37_v1, 0  ;;  %v45_v4 = vsel %vm43_vm2, %v36_v2, 0  ;;  %v770_v33 = vmov 2102212464   ;;  %v771_v35 = vmov 920167782  }
  0x28   :  { %v52_v5 = vand.u32 4294901760, %v49_v3  ;;  %v117_v6 = vand.u32 4294901760, %v45_v4  ;;  %v772_v39 = vmov 1326507024   ;;  %v773_v41 = vmov 683565275  }
  0x29   :  { %v774_v43 = vmov 2475754826   ;;  %v775_v46 = vmov 2131351028   ;;  %s776_s1 = smov [#allocation7]  }
  0x2a   :  { %v129_v7 = vsub.f32 %v49_v3, %v52_v5  ;;  %651 = vmatpush3.msra.mxu0 %v52_v5  ;;  %v118_v8 = vsub.f32 %v45_v4, %v117_v6  ;;  %636 = vmatpush3.msra.mxu1 %v52_v5  ;;  %s608_s4 = sshll.u32 %s776_s1, 4  ;;  %s609_s4 = int_to_ptr.vmem [resolvable:$true] %s608_s4 }
  0x2b   :  { %640 = vmatprep.subr.mxu1 %v768_v0  ;;  %655 = vmatprep.subr.mxu0 %v768_v0  ;;  %s738_s5 = scalar_lea.vmem %s609_s4, 32  ;;  %p743_p3 = scmp.lt.s32.totalorder %s609_s4, %s609_s4 }
  0x2c   :  { %v119_v9 = vand.u32 4294901760, %v118_v8  ;;  %v130_v10 = vand.u32 4294901760, %v129_v7  ;;  %p739_p2 = scmp.ne.s32.totalorder %s609_s4, %s738_s5  ;;  %p744_p4 = scmp.lt.s32.totalorder %s738_s5, %s738_s5 }
  0x2e   :  { %653 = vmatmul.mubr.f32.vlgmr.msra.gmra.mrb[0].mxu0 %v119_v9  ;;  %v120_v11 = vsub.f32 %v118_v8, %v119_v9  ;;  %v131_v12 = vsub.f32 %v129_v7, %v130_v10  ;;  %p745_p5 = por %p744_p4, %p743_p3 }
  0x2f   :  { %656 = vmatpush3.msra.mxu0 %v130_v10  ;;  %657 = vmatprep.mubr.msk.f32.mxu0 %vm769_vm0, %v768_v0 }
  0x30   :  { %v121_v13 = vand.u32 4294901760, %v120_v11  ;;  %v132_v14 = vand.u32 4294901760, %v131_v12  ;;  %660 = vmatprep.subr.mxu0 %v768_v0  ;;  %p746_p6 = pnand %p745_p5, %p739_p2 }
  0x32   :  { %638 = vmatmul.mubr.f32.vlgmr.msra.gmra.mrb[0].mxu1 %v121_v13 }
  0x33   :  { %641 = vmatpush3.msra.mxu1 %v132_v14  ;;  %642 = vmatprep.mubr.msk.f32.mxu1 %vm769_vm0, %v768_v0 }
  0x34   :  { %645 = vmatprep.subr.mxu1 %v768_v0 }
  0x36   :  { %658 = vmatmul.mubr.f32.vlgmr.msra.gmra.mrb[0].mxu0 %v117_v6 }
  0x37   :  { %661 = vmatpush3.msra.mxu0 %v52_v5  ;;  %662 = vmatprep.mubr.msk.f32.mxu0 %vm769_vm0, %v768_v0 }
  0x3a   :  { %643 = vmatmul.mubr.f32.vlgmr.msra.gmra.mrb[0].mxu1 %v117_v6 }
  0x3b   :  { %646 = vmatpush3.msra.mxu1 %v129_v7  ;;  %647 = vmatprep.mubr.msk.f32.mxu1 %vm769_vm0, %v768_v0 }
  0x3e   :  { %663 = vmatmul.mubr.f32.vlgmr.msra.gmra.mrb[0].mxu0 %v117_v6 }
  0x42   :  { %648 = vmatmul.mubr.f32.vlgmr.msra.gmra.mrb[0].mxu1 %v118_v8 }
 0x111   :  { %v493_v15 = vpop.f32.mrb[0].mxu0 }
 0x112   :  { %v664_v16 = vpop.f32.mrb[1].mxu0 }
 0x115   :  { %v273_v18 = vpop.f32.mrb[0].mxu1 }
 0x116   :  { %v665_v19 = vadd.f32 %v618_v17, %v273_v18  ;;  %v649_v20 = vpop.f32.mrb[1].mxu1 }
 0x118   :  { %v822_v21 = vadd.f32 %v665_v19, %v493_v15 }
 0x11a   :  { %v500_v22 = vand.u32 2139095040, %v822_v21  ;;  %v497_v23 = vand.u32 2147483647, %v822_v21  ;;  %vm499_vm10 = vcmp.lt.s32.totalorder %v822_v21, 0  ;;  %vm589_vm15 = vweird.f32 %v822_v21 }
 0x11c   :  { %v501_v24 = vshrl.u32 %v500_v22, 23  ;;  %v504_v26 = vand.u32 8388607, %v497_v23  ;;  %vm498_vm11 = vcmp.le.f32.partialorder %v497_v23, 0.7853982 }
 0x11e   :  { %v619_v25 = vadd.s32 4294967169, %v501_v24  ;;  %v505_v29 = vor.u32 8388608, %v504_v26 }
 0x120   :  { %v507_v27 = vadd.s32 1, %v619_v25  ;;  %v545_v37 = vshll.u32 %v505_v29, 8 }
 0x122   :  { %vm508_vm3 = vcmp.gt.s32.totalorder %v507_v27, 0 }
 0x123   :  { %v509_v28 = vsel %vm508_vm3, %v507_v27, 0 }
 0x124   :  { %v511_v30 = vand.u32 31, %v509_v28  ;;  %v510_v31 = vshrl.u32 %v509_v28, 5 }
 0x126   :  { %v512_v32 = vsub.s32 32, %v511_v30  ;;  %v523_v34 = vshll.u32 %v770_v33, %v511_v30  ;;  %v526_v36 = vshll.u32 %v771_v35, %v511_v30  ;;  %v514_v42 = vshll.u32 %v773_v41, %v511_v30 }
 0x127   :  { %v517_v45 = vshll.u32 %v774_v43, %v511_v30  ;;  %v520_v48 = vshll.u32 %v775_v46, %v511_v30  ;;  %vm532_vm4 = vcmp.lt.s32.totalorder %v510_v31, 4  ;;  %vm529_vm5 = vcmp.lt.s32.totalorder %v510_v31, 1 }
 0x128   :  { %v524_v38 = vshrl.u32 %v771_v35, %v512_v32  ;;  %v527_v40 = vshrl.u32 %v772_v39, %v512_v32  ;;  %v515_v44 = vshrl.u32 %v774_v43, %v512_v32  ;;  %v518_v47 = vshrl.u32 %v775_v46, %v512_v32 }
 0x129   :  { %v521_v49 = vshrl.u32 %v770_v33, %v512_v32  ;;  %v513_v53 = vshrl.u32 %v773_v41, %v512_v32  ;;  %vm530_vm6 = vcmp.lt.s32.totalorder %v510_v31, 2  ;;  %vm531_vm7 = vcmp.lt.s32.totalorder %v510_v31, 3 }
 0x12a   :  { %v525_v50 = vor.u32 %v524_v38, %v523_v34  ;;  %v528_v51 = vor.u32 %v527_v40, %v526_v36  ;;  %v516_v52 = vor.u32 %v515_v44, %v514_v42  ;;  %v519_v54 = vor.u32 %v518_v47, %v517_v45 }
 0x12b   :  { %v522_v55 = vor.u32 %v521_v49, %v520_v48 }
 0x12c   :  { %v538_v56 = vsel %vm532_vm4, %v525_v50, 920167782  ;;  %v542_v57 = vsel %vm532_vm4, %v528_v51, 1326507024  ;;  %v537_v59 = vsel %vm529_vm5, %v516_v52, %v519_v54  ;;  %v533_v62 = vsel %vm529_vm5, %v513_v53, %v516_v52 }
 0x12d   :  { %v534_v58 = vsel %vm532_vm4, %v522_v55, 2102212464  ;;  %v539_v60 = vsel %vm531_vm7, %v522_v55, %v538_v56  ;;  %v541_v61 = vsel %vm529_vm5, %v519_v54, %v522_v55  ;;  %v543_v1 = vsel %vm531_vm7, %v525_v50, %v542_v57 }
 0x12e   :  { %v535_v63 = vsel %vm531_vm7, %v519_v54, %v534_v58  ;;  %v540_v0 = vsel %vm530_vm6, %v537_v59, %v539_v60  ;;  %v544_v2 = vsel %vm530_vm6, %v541_v61, %v543_v1 }
 0x12f   :  { %v828_v3 = vmul.u32.u64.low %v545_v37, %v540_v0  ;;  %v829_v4 = vmul.u32.u64.high %v545_v37, %v540_v0, %v828_v3  ;;  %v831_v5 = vmul.u32.u64.low %v545_v37, %v544_v2  ;;  %v832_v6 = vmul.u32.u64.high %v545_v37, %v544_v2, %v831_v5 }
 0x130   :  { %v536_v7 = vsel %vm530_vm6, %v533_v62, %v535_v63 }
 0x131   :  { %v555_v8 = vadd.s32 1, %v829_v4  ;;  %v552_v9 = vmul.u32 %v545_v37, %v536_v7  ;;  %vm554_vm8 = vc.u32 %v832_v6, %v828_v3  ;;  %v553_v22 = vadd.s32 %v828_v3, %v832_v6 }
 0x133   :  { %v556_v10 = vsel %vm554_vm8, %v555_v8, %v829_v4 }
 0x134   :  { %v557_v11 = vadd.s32 %v556_v10, %v552_v9 }
 0x136   :  { %v558_v12 = vadd.s32 536870912, %v557_v11 }
 0x138   :  { %v559_v13 = vshrl.u32 %v558_v12, 30 }
 0x13a   :  { %v560_v14 = vshll.u32 %v559_v13, 30  ;;  %v583_v35 = vsub.s32 4, %v559_v13 }
 0x13c   :  { %v561_v15 = vsub.s32 %v557_v11, %v560_v14  ;;  %v584_v38 = vsel %vm499_vm10, %v583_v35, %v559_v13 }
 0x13d   :  { %v586_v40 = vsel %vm498_vm11, 0, %v584_v38 }
 0x13e   :  { %v563_v16 = vsub.s32 0, %v561_v15  ;;  %v590_v41 = vadd.s32 3, %v586_v40 }
 0x140   :  { %v620_v17 = vmin.u32 %v563_v16, %v561_v15  ;;  %v591_v42 = vand.u32 3, %v590_v41 }
 0x142   :  { %v565_v18 = vclz %v620_v17  ;;  %vm596_vm12 = vcmp.eq.s32.totalorder %v591_v42, 2  ;;  %vm593_vm13 = vcmp.eq.s32.totalorder %v591_v42, 0  ;;  %vm592_vm14 = vcmp.lt.s32.totalorder %v591_v42, 2 }
 0x144   :  { %v621_v19 = vadd.s32 4294967294, %v565_v18 }
 0x146   :  { %vm622_vm9 = vcmp.lt.s32.totalorder %v621_v19, 0 }
 0x147   :  { %v568_v20 = vsel %vm622_vm9, 0, %v621_v19 }
 0x148   :  { %v569_v24 = vsub.s32 32, %v568_v20  ;;  %v573_v25 = vsub.s32 4294967266, %v568_v20  ;;  %v570_v26 = vshll.u32 %v561_v15, %v568_v20 }
 0x14a   :  { %v571_v27 = vshrl.u32 %v553_v22, %v569_v24  ;;  %v574_v28 = vadd.s32 127, %v573_v25 }
 0x14c   :  { %v572_v29 = vor.u32 %v571_v27, %v570_v26  ;;  %v575_v30 = vshll.u32 %v574_v28, 23 }
 0x14e   :  { %v576_v31 = vor.u32 4788187, %v575_v30  ;;  %v579_v33 = vcvt.s32.f32 %v572_v29 }
 0x150   :  { %v577_v32 = vand.u32 2147483647, %v576_v31 }
 0x152   :  { %v580_v34 = vmul.f32 %v579_v33, %v577_v32 }
 0x154   :  { %v581_v36 = vxor.u32 2147483648, %v580_v34 }
 0x156   :  { %v582_v37 = vsel %vm499_vm10, %v581_v36, %v580_v34 }
 0x157   :  { %v585_v39 = vsel %vm498_vm11, %v822_v21, %v582_v37 }
 0x158   :  { %690 = vcosq.f32 %v585_v39 }
 0x159   :  { %692 = vsinq.f32 %v585_v39 }
 0x162   :  { %v691_v43 = vpop.eup %690 }
 0x163   :  { %v693_v44 = vpop.eup %692  ;;  %v597_v45 = vxor.u32 2147483648, %v691_v43 }
 0x164   :  { %v594_v46 = vxor.u32 2147483648, %v693_v44 }
 0x165   :  { %v598_v47 = vsel %vm596_vm12, %v597_v45, %v693_v44 }
 0x166   :  { %v595_v23 = vsel %vm593_vm13, %v691_v43, %v594_v46 }
 0x167   :  { %v599_v48 = vsel %vm592_vm14, %v595_v23, %v598_v47 }
 0x168   :  { %v600_v49 = vsel %vm589_vm15, nan, %v599_v48 }
 0x169   :  { %601 = vst [vmem:[#allocation7] sm:$0x3] %v600_v49 }
 0x16a   :  { %749 = shalt.err (!%p746_p6)
}
 0x16b   :  { %s750_s8 = scalar_lea.hbm %s857_s2, 32 }
 0x16c   :  { %p751_p7 = scmp.ne.s32.totalorder %s857_s2, %s750_s8  ;;  %p754_p8 = scmp.lt.u32.totalorder %s750_s8, %s857_s2 }
 0x16e   :  { %p756_p9 = pnand %p754_p8, %p751_p7 }
 0x170   :  { %759 = shalt.err (!%p756_p9)
}
 0x171   :  { %611 = dma.vmem_to_hbm [thread:$0]  %s609_s4, 32, %s857_s2, [#allocation4]  }
 0x172   :  { %764 = dma.done.wait [#allocation4], 32  }
 0x173   :  { %765 = vsyncadd [#allocation4], 4294967264 }
 0x174   :  { %615 = vsyncpa [#allocation3], 1 }
 0x175   :  { %616 = vsyncpa [#allocation6], 1 }
 0x176   :  { %617 = vsyncpa [#allocation4], 1 }

</bundles_post_ra>
